<compile_context>
chip_gen: v5e
topology: v5e:2x2
jax: 0.10.0
libtpu: 0.0.40
codegen_flags: <defaults>
</compile_context>

<pallas_src>
import jax
import jax.numpy as jnp
from jax import lax
from jax.experimental import pallas as pl
from jax.experimental.pallas import tpu as pltpu


def building_block_kernel(x_ref, w_ref, gb_ref, o_ref):
    x = x_ref[...]                                    # (B, K)  resident
    w = w_ref[...]                                    # (K, TN) lane-dense weight tile
    # Linear (bias omitted: exactly cancelled by BN's mean subtraction).
    y = lax.dot_general(x, w, (((1,), (0,)), ((), ())),
                        preferred_element_type=jnp.float32)    # (B, TN) f32
    # BatchNorm1d training-mode stats per feature (biased variance, eps=1e-5).
    mean = jnp.mean(y, axis=0, keepdims=True)                  # (1, TN)
    d = y - mean
    var = jnp.mean(d * d, axis=0, keepdims=True)               # (1, TN)
    gamma = gb_ref[0:1, :]                                     # (1, TN)
    beta = gb_ref[1:2, :]                                      # (1, TN)
    # Fold BN affine: row-only scale (rsqrt -> EUP slot), then one FMA + max.
    scale = gamma * lax.rsqrt(var + 1e-5)                      # (1, TN)
    o_ref[...] = jnp.maximum(d * scale + beta, 0.0).astype(o_ref.dtype)


def building_block(x, weight, bias, gamma, beta, *, tn=None,
                   mxu_dtype=jnp.float32, vmem_budget_bytes=24 << 20):
    """Forward of BuildingBlock (Linear -> BatchNorm1d(train stats) -> ReLU).

    x:      (B, insize)   float32
    weight: (outsize, insize)
    bias:   (outsize,)    -- accepted for interface fidelity, mathematically dead
                             under training-mode BatchNorm (mean subtraction).
    gamma, beta: (outsize,) BatchNorm affine parameters.
    mxu_dtype: pass jnp.bfloat16 on v6e/v7x for non-trivial insize/outsize
               (epilogue stays f32); default f32 for bit-tight small cases.
    """
    del bias  # exactly cancelled by BN's per-feature mean subtraction
    B, K = x.shape
    N = weight.shape[0]

    # One-time wrapper-side transpose to a lane-dense (K, N) layout, then pad
    # the feature axis to a multiple of 128 (pad gamma with 1, beta with 0 so
    # padded features are exactly 0 after BN+ReLU and slice off cleanly).
    wt = weight.T                                              # (K, N)
    n_pad = pl.cdiv(N, 128) * 128
    if n_pad != N:
        wt = jnp.pad(wt, ((0, 0), (0, n_pad - N)))
        gamma = jnp.pad(gamma, (0, n_pad - N), constant_values=1.0)
        beta = jnp.pad(beta, (0, n_pad - N))
    gb = jnp.stack([gamma, beta], axis=0)                      # (2, n_pad) f32

    x_op = x.astype(mxu_dtype)
    wt = wt.astype(mxu_dtype)
    op_itemsize = jnp.dtype(mxu_dtype).itemsize

    # Adaptive tile width: prefer one grid step covering the whole padded
    # feature axis; shrink (to a 128-multiple divisor of n_pad) only if the
    # double-buffered working set would blow the VMEM budget (sized with v7x's
    # 64 MiB physical / 32 MiB scoped default in mind).
    def vmem_bytes(t):
        return (op_itemsize * (B * K + 2 * K * t)      # x resident + w double-buffered
                + 4 * (2 * 2 * t + 2 * B * t))         # gb + out, double-buffered, f32
    if tn is None:
        tn = 128
        for cand in [n_pad] + [c for c in (4096, 2048, 1024, 512, 256)
                               if c < n_pad and n_pad % c == 0]:
            if vmem_bytes(cand) <= vmem_budget_bytes:
                tn = cand
                break
    assert n_pad % tn == 0 and tn % 128 == 0

    grid = (n_pad // tn,)
    cost = pl.CostEstimate(
        flops=2 * B * K * n_pad,
        transcendentals=n_pad,                                  # rsqrt per feature
        bytes_accessed=(op_itemsize * (B * K + K * n_pad)       # x once + weight once
                        + 4 * (2 * n_pad + B * n_pad)),         # gb + output
    )

    out = pl.pallas_call(
        building_block_kernel,
        out_shape=jax.ShapeDtypeStruct((B, n_pad), jnp.float32),
        grid_spec=pltpu.PrefetchScalarGridSpec(
            num_scalar_prefetch=0,
            grid=grid,
            in_specs=[
                pl.BlockSpec((B, K), lambda j: (0, 0)),        # x: resident across tiles
                pl.BlockSpec((K, tn), lambda j: (0, j)),       # weight: lane-dense tile
                pl.BlockSpec((2, tn), lambda j: (0, j)),       # packed gamma/beta tile
            ],
            out_specs=pl.BlockSpec((B, tn), lambda j: (0, j)),
        ),
        compiler_params=pltpu.CompilerParams(
            # Single-step grid: nothing to shard. Multi-tile: feature tiles are
            # fully independent (BN stats are per-feature).
            dimension_semantics=("arbitrary",) if grid[0] == 1 else ("parallel",),
        ),
        cost_estimate=cost,
    )(x_op, wt, gb)

    return out[:, :N] if n_pad != N else out


if __name__ == "__main__":
    # Small shapes consistent with the module: batch=8, insize=32, outsize=192.
    # outsize=192 exercises lane padding (-> 256) and the adaptive single-tile path.
    B, insize, outsize = 8, 32, 192

    key = jax.random.PRNGKey(0)
    kx, kw, kb = jax.random.split(key, 3)

    x = jax.random.normal(kx, (B, insize), dtype=jnp.float32)

    # PyTorch-style init: Linear uniform(+-1/sqrt(insize)); BN gamma=1, beta=0.
    bound = 1.0 / (insize ** 0.5)
    weight = jax.random.uniform(kw, (outsize, insize), jnp.float32, -bound, bound)
    bias = jax.random.uniform(kb, (outsize,), jnp.float32, -bound, bound)
    gamma = jnp.ones((outsize,), jnp.float32)
    beta = jnp.zeros((outsize,), jnp.float32)

    out = building_block(x, weight, bias, gamma, beta)
    out = jax.block_until_ready(out)

    # Plain-JAX reference (training-mode BatchNorm1d with batch stats, incl. bias).
    y = x @ weight.T + bias
    mean = jnp.mean(y, axis=0, keepdims=True)
    var = jnp.mean((y - mean) ** 2, axis=0, keepdims=True)
    ref = jnp.maximum((y - mean) / jnp.sqrt(var + 1e-5) * gamma + beta, 0.0)

    assert out.shape == (B, outsize)
    assert jnp.allclose(out, ref, atol=1e-4, rtol=1e-4)
    print("KERNEL_OK")
</pallas_src>

<mosaic_0001>
module attributes {stable_mosaic.version = 11 : i64} {
  func.func @building_block_kernel(%arg0: i32, %arg1: memref<8x32xf32, #tpu.memory_space<vmem>>, %arg2: memref<32x256xf32, #tpu.memory_space<vmem>>, %arg3: memref<2x256xf32, #tpu.memory_space<vmem>>, %arg4: memref<8x256xf32, #tpu.memory_space<vmem>>) attributes {dimension_semantics = [#tpu.dimension_semantics<arbitrary>], iteration_bounds = array<i64: 1>, scalar_prefetch = 0 : i64, scratch_operands = 0 : i64, tpu.core_type = #tpu.core_type<tc>, window_params = [{pipeline_mode = #tpu.pipeline_mode<synchronous>, transform_indices = @transform_0, window_bounds = array<i64: 8, 32>}, {transform_indices = @transform_1, window_bounds = array<i64: 32, 256>}, {transform_indices = @transform_2, window_bounds = array<i64: 2, 256>}, {transform_indices = @transform_3, window_bounds = array<i64: 8, 256>}]} {
    %c0 = arith.constant 0 : index
    %c0_0 = arith.constant 0 : index
    %0 = vector.load %arg1[%c0, %c0_0] : memref<8x32xf32, #tpu.memory_space<vmem>>, vector<8x32xf32>
    %c0_1 = arith.constant 0 : index
    %c0_2 = arith.constant 0 : index
    %1 = vector.load %arg2[%c0_1, %c0_2] : memref<32x256xf32, #tpu.memory_space<vmem>>, vector<32x256xf32>
    %cst = arith.constant dense<0.000000e+00> : vector<8x256xf32>
    %2 = tpu.matmul %0, %1, %cst {dimension_numbers = #tpu.dot_dimension_numbers<[1], [0], [0], [1], [0, 0, 1, 1], [], []>} : vector<8x32xf32>, vector<32x256xf32>, vector<8x256xf32> -> vector<8x256xf32>
    %cst_3 = arith.constant dense<0.000000e+00> : vector<256xf32>
    %3 = vector.multi_reduction <add>, %2, %cst_3 [0] : vector<8x256xf32> to vector<256xf32>
    %4 = vector.shape_cast %3 : vector<256xf32> to vector<1x256xf32>
    %cst_4 = arith.constant 8.000000e+00 : f32
    %5 = vector.broadcast %cst_4 : f32 to vector<1x256xf32>
    %6 = arith.divf %4, %5 : vector<1x256xf32>
    %7 = vector.broadcast %6 : vector<1x256xf32> to vector<8x256xf32>
    %8 = arith.subf %2, %7 : vector<8x256xf32>
    %9 = arith.mulf %8, %8 : vector<8x256xf32>
    %cst_5 = arith.constant dense<0.000000e+00> : vector<256xf32>
    %10 = vector.multi_reduction <add>, %9, %cst_5 [0] : vector<8x256xf32> to vector<256xf32>
    %11 = vector.shape_cast %10 : vector<256xf32> to vector<1x256xf32>
    %cst_6 = arith.constant 8.000000e+00 : f32
    %12 = vector.broadcast %cst_6 : f32 to vector<1x256xf32>
    %13 = arith.divf %11, %12 : vector<1x256xf32>
    %c0_7 = arith.constant 0 : index
    %c0_8 = arith.constant 0 : index
    %14 = vector.load %arg3[%c0_7, %c0_8] : memref<2x256xf32, #tpu.memory_space<vmem>>, vector<1x256xf32>
    %c1 = arith.constant 1 : index
    %c0_9 = arith.constant 0 : index
    %15 = vector.load %arg3[%c1, %c0_9] : memref<2x256xf32, #tpu.memory_space<vmem>>, vector<1x256xf32>
    %cst_10 = arith.constant 9.99999974E-6 : f32
    %16 = vector.broadcast %cst_10 : f32 to vector<1x256xf32>
    %17 = arith.addf %13, %16 : vector<1x256xf32>
    %18 = math.rsqrt %17 : vector<1x256xf32>
    %19 = arith.mulf %14, %18 : vector<1x256xf32>
    %20 = vector.broadcast %19 : vector<1x256xf32> to vector<8x256xf32>
    %21 = arith.mulf %8, %20 : vector<8x256xf32>
    %22 = vector.broadcast %15 : vector<1x256xf32> to vector<8x256xf32>
    %23 = arith.addf %21, %22 : vector<8x256xf32>
    %cst_11 = arith.constant 0.000000e+00 : f32
    %24 = vector.broadcast %cst_11 : f32 to vector<8x256xf32>
    %25 = arith.maximumf %23, %24 : vector<8x256xf32>
    %c0_12 = arith.constant 0 : index
    %c0_13 = arith.constant 0 : index
    %26 = vector.load %arg4[%c0_12, %c0_13] : memref<8x256xf32, #tpu.memory_space<vmem>>, vector<8x256xf32>
    tpu.vector_store %arg4[%c0_12, %c0_13], %25 {strides = array<i32>} : memref<8x256xf32, #tpu.memory_space<vmem>>, vector<8x256xf32>,
    return
  }
  func.func @transform_0(%arg0: i32) -> (i32, i32) {
    %c0_i32 = arith.constant 0 : i32
    %c0_i32_0 = arith.constant 0 : i32
    %c0_i32_1 = arith.constant 0 : i32
    return %c0_i32, %c0_i32_0 : i32, i32
  }
  func.func @transform_1(%arg0: i32) -> (i32, i32) {
    %c0_i32 = arith.constant 0 : i32
    %c0_i32_0 = arith.constant 0 : i32
    return %c0_i32, %arg0 : i32, i32
  }
  func.func @transform_2(%arg0: i32) -> (i32, i32) {
    %c0_i32 = arith.constant 0 : i32
    %c0_i32_0 = arith.constant 0 : i32
    return %c0_i32, %arg0 : i32, i32
  }
  func.func @transform_3(%arg0: i32) -> (i32, i32) {
    %c0_i32 = arith.constant 0 : i32
    %c0_i32_0 = arith.constant 0 : i32
    return %c0_i32, %arg0 : i32, i32
  }
}

</mosaic_0001>

<bundles_post_ra>
// kernel: tpu_custom_call.1
= control target key start
LH: loop header
LB: loop body
LE: loop exit
PB: predicated region body
PF: predicated region fallthrough
CT: control target
= control target key end

     0   :  { %8 = vsyncpa [#allocation3], 0  ;;  %s374_s0 = inlined_call_operand.hbm [shape: f32[8,32], index: 0, kind: input, shape index: {}]   ;;  %s375_s1 = inlined_call_operand.hbm [shape: f32[32,256], index: 1, kind: input, shape index: {}]   ;;  %s376_s2 = inlined_call_operand.hbm [shape: f32[2,256], index: 2, kind: input, shape index: {}]   ;;  %s377_s3 = inlined_call_operand.hbm [shape: f32[8,256], index: 3, kind: output, shape index: {}]  }
   0x1   :  { %9 = vsyncpa [#allocation6], 0  ;;  %s26_s14 = sshll.u32 %s375_s1, 4  ;;  %s27_s14 = int_to_ptr.hbm [resolvable:$true] %s26_s14 }
   0x2   :  { %10 = vsyncpa [#allocation4], 0  ;;  %s335_s15 = smov [#allocation5]   ;;  %s16_s19 = sshll.u32 %s374_s0, 4  ;;  %s17_s19 = int_to_ptr.hbm [resolvable:$true] %s16_s19 }
   0x3   :  { %s28_s16 = sshll.u32 %s335_s15, 4  ;;  %s336_s20 = smov 256   ;;  %s29_s16 = int_to_ptr.vmem [resolvable:$true] %s28_s16 }
   0x4   :  { %s337_s21 = smov 16   ;;  %s338_s22 = smov [#allocation2]  }
   0x5   :  { %34 = dma.hbm_to_vmem [thread:$0]  %s27_s14, 1024, %s29_s16, [#allocation6], %s336_s20, %s336_s20, %s337_s21  }
   0x6   :  { %s18_s23 = sshll.u32 %s338_s22, 4  ;;  %s40_s26 = sshll.u32 %s376_s2, 4  ;;  %s19_s23 = int_to_ptr.vmem [resolvable:$true] %s18_s23  ;;  %s41_s26 = int_to_ptr.hbm [resolvable:$true] %s40_s26 }
   0x7   :  { %21 = dma.hbm_to_vmem [thread:$0]  %s17_s19, 128, %s19_s23, [#allocation3]  }
   0x8   :  { %s339_s1 = smov [#allocation7]  }
   0x9   :  { %s42_s27 = sshll.u32 %s339_s1, 4  ;;  %s43_s27 = int_to_ptr.vmem [resolvable:$true] %s42_s27 }
   0xa   :  { %45 = dma.hbm_to_vmem [thread:$0]  %s41_s26, 64, %s43_s27, [#allocation6]  }
   0xb   :  { %329 = dma.done.wait [#allocation3], 128  }
   0xc   :  { %330 = vsyncadd [#allocation3], 4294967168 }
   0xd   :  { %331 = dma.done.wait [#allocation6], 1088  }
   0xe   :  { %332 = vsyncadd [#allocation6], 4294966208  ;;  %v65_v0 = vld [vmem:[#allocation5 + $0x30] sm:$0xff]  ;;  %v66_v1 = vld [vmem:[#allocation5 + $0x38] sm:$0xff]  ;;  %vm67_vm0 = vcmask 261120   ;;  %v340_v9 = vmov 8.0  }
   0xf   :  { %v63_v2 = vld [vmem:[#allocation5 + $0x20] sm:$0xff]  ;;  %83 = vmatpush.msra.mxu0 %v65_v0  ;;  %103 = vmatpush.msra.mxu1 %v66_v1  ;;  %v64_v3 = vld [vmem:[#allocation5 + $0x28] sm:$0xff]  ;;  %v61_v4 = vld [vmem:[#allocation5 + $0x10] sm:$0xff]  ;;  %227 = vrcp.f32 %v340_v9  ;;  %vm178_vm7 = vcmask 1040384   ;;  %s341_s0 = smov [#allocation8]   ;;  %s207_s30 = sshll.u32 %s377_s3, 4  ;;  %s208_s30 = int_to_ptr.hbm [resolvable:$true] %s207_s30 }
  0x10   :  { %v62_v5 = vld [vmem:[#allocation5 + $0x18] sm:$0xff]  ;;  %v59_v6 = vld [vmem:[#allocation5] sm:$0xff]  ;;  %v60_v7 = vld [vmem:[#allocation5 + $0x8] sm:$0xff]  ;;  %s205_s2 = sshll.u32 %s341_s0, 4  ;;  %s206_s2 = int_to_ptr.vmem [resolvable:$true] %s205_s2 }
  0x11   :  { %84 = vmatpush.msra.mxu0 %v63_v2  ;;  %104 = vmatpush.msra.mxu1 %v64_v3  ;;  %v58_v8 = vld [vmem:[#allocation2] sm:$0xff]  ;;  %v150_v1 = vld [vmem:[#allocation7] ss:$2 sm:$0x3] }
  0x13   :  { %85 = vmatpush.msra.mxu0 %v61_v4  ;;  %105 = vmatpush.msra.mxu1 %v62_v5  ;;  %v152_v4 = vld [vmem:[#allocation7 + $0x1] ss:$2 sm:$0x3] }
  0x14   :  { %v190_v9 = vperm.slane %v152_v4, 0 }
  0x15   :  { %86 = vmatpush.msra.mxu0 %v59_v6  ;;  %106 = vmatpush.msra.mxu1 %v60_v7  ;;  %v228_v10 = vpop.eup %227 }
  0x16   :  { %218 = vmatmul.msk.f32.vlgmr.msra.gmra.mxu0 %vm67_vm0, %v58_v8  ;;  %219 = vmatmul.msk.f32.vlgmr.msra.gmra.mxu1 %vm67_vm0, %v58_v8  ;;  %v124_v11 = vmul.f32 8.0, %v228_v10  ;;  %vm128_vm1 = vweird.f32 %v228_v10 }
  0x18   :  { %v125_v12 = vsub.f32 1.0, %v124_v11 }
  0x1a   :  { %v126_v17 = vmul.f32 %v228_v10, %v125_v12 }
  0x1c   :  { %v127_v22 = vadd.f32 %v228_v10, %v126_v17 }
  0x1e   :  { %v129_v27 = vsel %vm128_vm1, %v228_v10, %v127_v22  ;;  %v191_v10 = vperm.slane %v152_v4, 1 }
  0x93   :  { %v88_v13 = vpop.f32.mrf.mxu0  ;;  %v108_v14 = vpop.f32.mrf.mxu1 }
  0x94   :  { %v111_v15 = vrot.slane %v88_v13, 4  ;;  %v117_v16 = vrot.slane %v108_v14, 4 }
  0x96   :  { %v112_v18 = vadd.f32 %v111_v15, %v88_v13  ;;  %v118_v19 = vadd.f32 %v117_v16, %v108_v14 }
  0x98   :  { %v113_v20 = vrot.slane %v112_v18, 2  ;;  %v119_v21 = vrot.slane %v118_v19, 2 }
  0x9a   :  { %v114_v23 = vadd.f32 %v113_v20, %v112_v18  ;;  %v120_v24 = vadd.f32 %v119_v21, %v118_v19 }
  0x9c   :  { %v115_v25 = vrot.slane %v114_v23, 1  ;;  %v121_v26 = vrot.slane %v120_v24, 1 }
  0x9e   :  { %v116_v28 = vadd.f32 %v115_v25, %v114_v23  ;;  %v122_v29 = vadd.f32 %v121_v26, %v120_v24 }
  0xa0   :  { %v130_v30 = vmul.f32 %v129_v27, %v116_v28  ;;  %v131_v31 = vmul.f32 %v129_v27, %v122_v29 }
  0xa2   :  { %v132_v32 = vsub.f32 %v88_v13, %v130_v30  ;;  %v133_v33 = vsub.f32 %v108_v14, %v131_v31 }
  0xa4   :  { %v134_v34 = vmul.f32 %v132_v32, %v132_v32  ;;  %v135_v35 = vmul.f32 %v133_v33, %v133_v33 }
  0xa6   :  { %v136_v36 = vrot.slane %v134_v34, 4  ;;  %v142_v37 = vrot.slane %v135_v35, 4 }
  0xa8   :  { %v137_v38 = vadd.f32 %v136_v36, %v134_v34  ;;  %v143_v39 = vadd.f32 %v142_v37, %v135_v35 }
  0xaa   :  { %v138_v40 = vrot.slane %v137_v38, 2  ;;  %v144_v41 = vrot.slane %v143_v39, 2 }
  0xac   :  { %v139_v42 = vadd.f32 %v138_v40, %v137_v38  ;;  %v145_v43 = vadd.f32 %v144_v41, %v143_v39 }
  0xae   :  { %v140_v44 = vrot.slane %v139_v42, 1  ;;  %v146_v45 = vrot.slane %v145_v43, 1 }
  0xb0   :  { %v141_v46 = vadd.f32 %v140_v44, %v139_v42  ;;  %v147_v47 = vadd.f32 %v146_v45, %v145_v43 }
  0xb2   :  { %v148_v48 = vmul.f32 %v141_v46, %v129_v27  ;;  %v149_v49 = vmul.f32 %v147_v47, %v129_v27 }
  0xb4   :  { %v153_v50 = vadd.f32 1e-05, %v148_v48  ;;  %v154_v51 = vadd.f32 1e-05, %v149_v49 }
  0xb6   :  { %229 = vrsqrt.f32 %v153_v50  ;;  %vm171_vm4 = vweird.f32 %v154_v51  ;;  %vm161_vm6 = vweird.f32 %v153_v50 }
  0xb7   :  { %231 = vrsqrt.f32 %v154_v51 }
  0xbc   :  { %v230_v52 = vpop.eup %229 }
  0xbd   :  { %v232_v53 = vpop.eup %231  ;;  %v156_v54 = vmul.f32 %v230_v52, %v153_v50  ;;  %vm162_vm3 = vweird.f32 %v230_v52 }
  0xbe   :  { %v166_v55 = vmul.f32 %v232_v53, %v154_v51  ;;  %vm172_vm2 = vweird.f32 %v232_v53  ;;  %vm163_vm8 = vmor %vm161_vm6, %vm162_vm3 }
  0xbf   :  { %v157_v56 = vmul.f32 %v230_v52, %v156_v54  ;;  %vm173_vm5 = vmor %vm171_vm4, %vm172_vm2 }
  0xc0   :  { %v167_v57 = vmul.f32 %v232_v53, %v166_v55 }
  0xc1   :  { %v158_v58 = vmul.f32 0.5, %v157_v56 }
  0xc2   :  { %v168_v59 = vmul.f32 0.5, %v167_v57 }
  0xc3   :  { %v159_v60 = vsub.f32 1.5, %v158_v58 }
  0xc4   :  { %v169_v61 = vsub.f32 1.5, %v168_v59 }
  0xc5   :  { %v160_v62 = vmul.f32 %v230_v52, %v159_v60 }
  0xc6   :  { %v170_v63 = vmul.f32 %v232_v53, %v169_v61 }
  0xc7   :  { %v164_v3 = vsel %vm163_vm8, %v230_v52, %v160_v62 }
  0xc8   :  { %v174_v0 = vsel %vm173_vm5, %v232_v53, %v170_v63 }
  0xc9   :  { %v177_v2 = vrot.slane %v174_v0, 7 }
  0xcb   :  { %v179_v5 = vsel %vm178_vm7, %v164_v3, %v177_v2 }
  0xcc   :  { %v181_v6 = vmul.f32 %v179_v5, %v150_v1 }
  0xce   :  { %v183_v7 = vperm.slane %v181_v6, 0  ;;  %v184_v8 = vperm.slane %v181_v6, 1 }
  0xd0   :  { %v188_v11 = vmul.f32 %v184_v8, %v133_v33  ;;  %v187_v12 = vmul.f32 %v183_v7, %v132_v32 }
  0xd2   :  { %v195_v13 = vadd.f32 %v191_v10, %v188_v11  ;;  %v194_v14 = vadd.f32 %v190_v9, %v187_v12 }
  0xd4   :  { %v197_v15 = vmax.f32 %v195_v13, 0.0  ;;  %v196_v16 = vmax.f32 %v194_v14, 0.0 }
  0xd6   :  { %199 = vst [vmem:[#allocation8 + $0x8] sm:$0xff] %v197_v15 }
  0xd7   :  { %198 = vst [vmem:[#allocation8] sm:$0xff] %v196_v16 }
  0xd8   :  { %210 = dma.vmem_to_hbm [thread:$0]  %s206_s2, 256, %s208_s30, [#allocation4]  }
  0xd9   :  { %333 = dma.done.wait [#allocation4], 256  }
  0xda   :  { %334 = vsyncadd [#allocation4], 4294967040 }
  0xdb   :  { %215 = vsyncpa [#allocation3], 1 }
  0xdc   :  { %216 = vsyncpa [#allocation6], 1 }
  0xdd   :  { %217 = vsyncpa [#allocation4], 1 }

</bundles_post_ra>
